<compile_context>
chip_gen: v7x
topology: tpu7x:2x2x1
jax: 0.10.0
libtpu: 0.0.40
codegen_flags: <defaults>
</compile_context>

<pallas_src>
import jax
import jax.numpy as jnp
from jax.experimental import pallas as pl
from jax.experimental.pallas import tpu as pltpu


def _round_up(x, m):
    return ((x + m - 1) // m) * m


def mlp_kernel(x_ref, w1_ref, b1_ref, w2_ref, b2_ref,
               w3_ref, b3_ref, w4_ref, b4_ref, o_ref):
    """One batch tile of the 4-layer MLP.

    x_ref : (tb, Dp)   bf16
    w1    : (Dp, 128)  bf16    b1: (1, 128) f32
    w2    : (128, 128) bf16    b2: (1, 128) f32
    w3    : (128, 64)  bf16    b3: (1, 64)  f32
    w4    : (1, 64)    f32     b4: (1, 1)   f32
    o_ref : (1, tb)    f32     (lane-dense output row)
    """
    x = x_ref[...]
    # Layers 1-3 on the MXU: bf16 inputs, f32 accumulation; bias + ReLU in f32,
    # then cast back to bf16 for the next matmul.
    h = jnp.dot(x, w1_ref[...], preferred_element_type=jnp.float32) + b1_ref[...]
    h = jnp.maximum(h, 0.0).astype(jnp.bfloat16)
    h = jnp.dot(h, w2_ref[...], preferred_element_type=jnp.float32) + b2_ref[...]
    h = jnp.maximum(h, 0.0).astype(jnp.bfloat16)
    h = jnp.dot(h, w3_ref[...], preferred_element_type=jnp.float32) + b3_ref[...]
    h3 = jnp.maximum(h, 0.0)                               # (tb, 64) f32

    # Final Linear(64, 1): an N=1 matmul wastes the MXU, so do it on the
    # VPU/XLU: broadcast-multiply by the (1, 64) weight row and lane-reduce.
    # The result is written as a lane-dense (1, tb) row (no masked stores).
    out_vec = jnp.sum(h3 * w4_ref[...], axis=-1)           # (tb,) f32
    o_ref[...] = (out_vec[None, :] + b4_ref[...]).astype(o_ref.dtype)


def mheight_mlp_forward(x, params, *, tb=256):
    """x: (B, D) float32 -> (B, 1) float32."""
    B, D = x.shape

    # Batch tile: multiple of 8 sublanes, capped at the (sublane-padded) batch.
    tb = max(8, min(_round_up(tb, 8), _round_up(B, 8)))
    B_pad = _round_up(B, tb)
    D_pad = _round_up(D, 128)

    # Pad features to a full lane tile and batch to a whole number of tiles.
    # Zero-padded feature columns / w1 rows contribute nothing to the matmul.
    xp = jnp.pad(x, ((0, B_pad - B), (0, D_pad - D))).astype(jnp.bfloat16)
    w1 = jnp.pad(params["w1"], ((0, D_pad - D), (0, 0))).astype(jnp.bfloat16)
    w2 = params["w2"].astype(jnp.bfloat16)
    w3 = params["w3"].astype(jnp.bfloat16)
    w4 = params["w4"].reshape(1, -1).astype(jnp.float32)   # (1, 64) row for VPU path
    b1 = params["b1"].astype(jnp.float32)
    b2 = params["b2"].astype(jnp.float32)
    b3 = params["b3"].astype(jnp.float32)
    b4 = params["b4"].reshape(1, 1).astype(jnp.float32)

    # Weights/biases (~116 KB total) stay VMEM-resident: constant block index
    # across the grid means Pallas does not re-DMA them per step.
    def full_spec(arr):
        return pl.BlockSpec(arr.shape, lambda i: (0, 0))

    grid = (B_pad // tb,)
    out_row = pl.pallas_call(
        mlp_kernel,
        out_shape=jax.ShapeDtypeStruct((1, B_pad), jnp.float32),
        grid_spec=pltpu.PrefetchScalarGridSpec(
            num_scalar_prefetch=0,
            grid=grid,
            in_specs=[
                pl.BlockSpec((tb, D_pad), lambda i: (i, 0)),  # x: tiled over batch
                full_spec(w1), full_spec(b1),
                full_spec(w2), full_spec(b2),
                full_spec(w3), full_spec(b3),
                full_spec(w4), full_spec(b4),
            ],
            out_specs=pl.BlockSpec((1, tb), lambda i: (0, i)),  # lane-dense row
        ),
        compiler_params=pltpu.CompilerParams(
            dimension_semantics=("parallel",)),
    )(xp, w1, b1, w2, b2, w3, b3, w4, b4)

    return out_row[0, :B].reshape(B, 1)


def init_params(key, input_dim):
    """Deterministic init matching nn.Linear shapes:
       Linear(input_dim,128) -> Linear(128,128) -> Linear(128,64) -> Linear(64,1)."""
    dims = [(input_dim, 128), (128, 128), (128, 64), (64, 1)]
    params = {}
    for idx, (fan_in, fan_out) in enumerate(dims, start=1):
        key, kw, kb = jax.random.split(key, 3)
        bound = 1.0 / jnp.sqrt(fan_in)
        params[f"w{idx}"] = jax.random.uniform(
            kw, (fan_in, fan_out), jnp.float32, -bound, bound)
        params[f"b{idx}"] = jax.random.uniform(
            kb, (1, fan_out), jnp.float32, -bound, bound)
    return params


def reference_forward(x, params):
    """Pure-JAX reference mirroring the kernel numerics (bf16 matmul inputs,
       f32 accumulation, f32 bias/ReLU, f32 VPU-style final layer)."""
    xb = x.astype(jnp.bfloat16)
    w1 = params["w1"].astype(jnp.bfloat16)
    w2 = params["w2"].astype(jnp.bfloat16)
    w3 = params["w3"].astype(jnp.bfloat16)
    h = jnp.maximum(jnp.dot(xb, w1, preferred_element_type=jnp.float32) + params["b1"], 0.0)
    h = jnp.maximum(jnp.dot(h.astype(jnp.bfloat16), w2,
                            preferred_element_type=jnp.float32) + params["b2"], 0.0)
    h = jnp.maximum(jnp.dot(h.astype(jnp.bfloat16), w3,
                            preferred_element_type=jnp.float32) + params["b3"], 0.0)
    out = jnp.sum(h * params["w4"].reshape(1, -1), axis=-1, keepdims=True)
    return out + params["b4"]


if __name__ == "__main__":
    key = jax.random.PRNGKey(0)
    # input_dim mimics flat_P (e.g. 4x8=32 entries) concatenated with [n, k, m]
    batch, input_dim = 16, 35
    key, kx, kp = jax.random.split(key, 3)
    x = jax.random.normal(kx, (batch, input_dim), jnp.float32)
    params = init_params(kp, input_dim)

    out = mheight_mlp_forward(x, params, tb=256)
    out = jax.block_until_ready(out)

    ref = reference_forward(x, params)
    assert out.shape == (batch, 1)
    assert jnp.allclose(out, ref, atol=1e-3, rtol=1e-3), "mismatch vs reference"
    print("KERNEL_OK")
</pallas_src>

<mosaic_0001>
module attributes {stable_mosaic.version = 11 : i64} {
  func.func @mlp_kernel(%arg0: i32, %arg1: memref<16x128xbf16, #tpu.memory_space<vmem>>, %arg2: memref<128x128xbf16, #tpu.memory_space<vmem>>, %arg3: memref<1x128xf32, #tpu.memory_space<vmem>>, %arg4: memref<128x128xbf16, #tpu.memory_space<vmem>>, %arg5: memref<1x128xf32, #tpu.memory_space<vmem>>, %arg6: memref<128x64xbf16, #tpu.memory_space<vmem>>, %arg7: memref<1x64xf32, #tpu.memory_space<vmem>>, %arg8: memref<1x64xf32, #tpu.memory_space<vmem>>, %arg9: memref<1x1xf32, #tpu.memory_space<vmem>>, %arg10: memref<1x16xf32, #tpu.memory_space<vmem>>) attributes {dimension_semantics = [#tpu.dimension_semantics<parallel>], iteration_bounds = array<i64: 1>, scalar_prefetch = 0 : i64, scratch_operands = 0 : i64, tpu.core_type = #tpu.core_type<tc>, window_params = [{transform_indices = @transform_0, window_bounds = array<i64: 16, 128>}, {pipeline_mode = #tpu.pipeline_mode<synchronous>, transform_indices = @transform_1, window_bounds = array<i64: 128, 128>}, {pipeline_mode = #tpu.pipeline_mode<synchronous>, transform_indices = @transform_2, window_bounds = array<i64: 1, 128>}, {pipeline_mode = #tpu.pipeline_mode<synchronous>, transform_indices = @transform_3, window_bounds = array<i64: 128, 128>}, {pipeline_mode = #tpu.pipeline_mode<synchronous>, transform_indices = @transform_4, window_bounds = array<i64: 1, 128>}, {pipeline_mode = #tpu.pipeline_mode<synchronous>, transform_indices = @transform_5, window_bounds = array<i64: 128, 64>}, {pipeline_mode = #tpu.pipeline_mode<synchronous>, transform_indices = @transform_6, window_bounds = array<i64: 1, 64>}, {pipeline_mode = #tpu.pipeline_mode<synchronous>, transform_indices = @transform_7, window_bounds = array<i64: 1, 64>}, {pipeline_mode = #tpu.pipeline_mode<synchronous>, transform_indices = @transform_8, window_bounds = array<i64: 1, 1>}, {transform_indices = @transform_9, window_bounds = array<i64: 1, 16>}]} {
    %c0 = arith.constant 0 : index
    %c0_0 = arith.constant 0 : index
    %0 = vector.load %arg1[%c0, %c0_0] : memref<16x128xbf16, #tpu.memory_space<vmem>>, vector<16x128xbf16>
    %c0_1 = arith.constant 0 : index
    %c0_2 = arith.constant 0 : index
    %1 = vector.load %arg2[%c0_1, %c0_2] : memref<128x128xbf16, #tpu.memory_space<vmem>>, vector<128x128xbf16>
    %cst = arith.constant dense<0.000000e+00> : vector<16x128xf32>
    %2 = tpu.matmul %0, %1, %cst {dimension_numbers = #tpu.dot_dimension_numbers<[1], [0], [0], [1], [0, 0, 1, 1], [], []>} : vector<16x128xbf16>, vector<128x128xbf16>, vector<16x128xf32> -> vector<16x128xf32>
    %c0_3 = arith.constant 0 : index
    %c0_4 = arith.constant 0 : index
    %3 = vector.load %arg3[%c0_3, %c0_4] : memref<1x128xf32, #tpu.memory_space<vmem>>, vector<1x128xf32>
    %4 = vector.broadcast %3 : vector<1x128xf32> to vector<16x128xf32>
    %5 = arith.addf %2, %4 : vector<16x128xf32>
    %cst_5 = arith.constant 0.000000e+00 : f32
    %6 = vector.broadcast %cst_5 : f32 to vector<16x128xf32>
    %7 = arith.maximumf %5, %6 : vector<16x128xf32>
    %8 = arith.truncf %7 : vector<16x128xf32> to vector<16x128xbf16>
    %c0_6 = arith.constant 0 : index
    %c0_7 = arith.constant 0 : index
    %9 = vector.load %arg4[%c0_6, %c0_7] : memref<128x128xbf16, #tpu.memory_space<vmem>>, vector<128x128xbf16>
    %cst_8 = arith.constant dense<0.000000e+00> : vector<16x128xf32>
    %10 = tpu.matmul %8, %9, %cst_8 {dimension_numbers = #tpu.dot_dimension_numbers<[1], [0], [0], [1], [0, 0, 1, 1], [], []>} : vector<16x128xbf16>, vector<128x128xbf16>, vector<16x128xf32> -> vector<16x128xf32>
    %c0_9 = arith.constant 0 : index
    %c0_10 = arith.constant 0 : index
    %11 = vector.load %arg5[%c0_9, %c0_10] : memref<1x128xf32, #tpu.memory_space<vmem>>, vector<1x128xf32>
    %12 = vector.broadcast %11 : vector<1x128xf32> to vector<16x128xf32>
    %13 = arith.addf %10, %12 : vector<16x128xf32>
    %cst_11 = arith.constant 0.000000e+00 : f32
    %14 = vector.broadcast %cst_11 : f32 to vector<16x128xf32>
    %15 = arith.maximumf %13, %14 : vector<16x128xf32>
    %16 = arith.truncf %15 : vector<16x128xf32> to vector<16x128xbf16>
    %c0_12 = arith.constant 0 : index
    %c0_13 = arith.constant 0 : index
    %17 = vector.load %arg6[%c0_12, %c0_13] : memref<128x64xbf16, #tpu.memory_space<vmem>>, vector<128x64xbf16>
    %cst_14 = arith.constant dense<0.000000e+00> : vector<16x64xf32>
    %18 = tpu.matmul %16, %17, %cst_14 {dimension_numbers = #tpu.dot_dimension_numbers<[1], [0], [0], [1], [0, 0, 1, 1], [], []>} : vector<16x128xbf16>, vector<128x64xbf16>, vector<16x64xf32> -> vector<16x64xf32>
    %c0_15 = arith.constant 0 : index
    %c0_16 = arith.constant 0 : index
    %19 = vector.load %arg7[%c0_15, %c0_16] : memref<1x64xf32, #tpu.memory_space<vmem>>, vector<1x64xf32>
    %20 = vector.broadcast %19 : vector<1x64xf32> to vector<16x64xf32>
    %21 = arith.addf %18, %20 : vector<16x64xf32>
    %cst_17 = arith.constant 0.000000e+00 : f32
    %22 = vector.broadcast %cst_17 : f32 to vector<16x64xf32>
    %23 = arith.maximumf %21, %22 : vector<16x64xf32>
    %c0_18 = arith.constant 0 : index
    %c0_19 = arith.constant 0 : index
    %24 = vector.load %arg8[%c0_18, %c0_19] : memref<1x64xf32, #tpu.memory_space<vmem>>, vector<1x64xf32>
    %25 = vector.broadcast %24 : vector<1x64xf32> to vector<16x64xf32>
    %26 = arith.mulf %23, %25 : vector<16x64xf32>
    %cst_20 = arith.constant dense<0.000000e+00> : vector<16xf32>
    %27 = vector.multi_reduction <add>, %26, %cst_20 [1] : vector<16x64xf32> to vector<16xf32>
    %28 = vector.shape_cast %27 : vector<16xf32> to vector<1x16xf32>
    %c0_21 = arith.constant 0 : index
    %c0_22 = arith.constant 0 : index
    %29 = vector.load %arg9[%c0_21, %c0_22] : memref<1x1xf32, #tpu.memory_space<vmem>>, vector<1x1xf32>
    %30 = vector.broadcast %29 : vector<1x1xf32> to vector<1x16xf32>
    %31 = arith.addf %28, %30 : vector<1x16xf32>
    %c0_23 = arith.constant 0 : index
    %c0_24 = arith.constant 0 : index
    %32 = vector.load %arg10[%c0_23, %c0_24] : memref<1x16xf32, #tpu.memory_space<vmem>>, vector<1x16xf32>
    tpu.vector_store %arg10[%c0_23, %c0_24], %31 {strides = array<i32>} : memref<1x16xf32, #tpu.memory_space<vmem>>, vector<1x16xf32>,
    return
  }
  func.func @transform_0(%arg0: i32) -> (i32, i32) {
    %c0_i32 = arith.constant 0 : i32
    %c0_i32_0 = arith.constant 0 : i32
    return %arg0, %c0_i32 : i32, i32
  }
  func.func @transform_1(%arg0: i32) -> (i32, i32) {
    %c0_i32 = arith.constant 0 : i32
    %c0_i32_0 = arith.constant 0 : i32
    %c0_i32_1 = arith.constant 0 : i32
    return %c0_i32, %c0_i32_0 : i32, i32
  }
  func.func @transform_2(%arg0: i32) -> (i32, i32) {
    %c0_i32 = arith.constant 0 : i32
    %c0_i32_0 = arith.constant 0 : i32
    %c0_i32_1 = arith.constant 0 : i32
    return %c0_i32, %c0_i32_0 : i32, i32
  }
  func.func @transform_3(%arg0: i32) -> (i32, i32) {
    %c0_i32 = arith.constant 0 : i32
    %c0_i32_0 = arith.constant 0 : i32
    %c0_i32_1 = arith.constant 0 : i32
    return %c0_i32, %c0_i32_0 : i32, i32
  }
  func.func @transform_4(%arg0: i32) -> (i32, i32) {
    %c0_i32 = arith.constant 0 : i32
    %c0_i32_0 = arith.constant 0 : i32
    %c0_i32_1 = arith.constant 0 : i32
    return %c0_i32, %c0_i32_0 : i32, i32
  }
  func.func @transform_5(%arg0: i32) -> (i32, i32) {
    %c0_i32 = arith.constant 0 : i32
    %c0_i32_0 = arith.constant 0 : i32
    %c0_i32_1 = arith.constant 0 : i32
    return %c0_i32, %c0_i32_0 : i32, i32
  }
  func.func @transform_6(%arg0: i32) -> (i32, i32) {
    %c0_i32 = arith.constant 0 : i32
    %c0_i32_0 = arith.constant 0 : i32
    %c0_i32_1 = arith.constant 0 : i32
    return %c0_i32, %c0_i32_0 : i32, i32
  }
  func.func @transform_7(%arg0: i32) -> (i32, i32) {
    %c0_i32 = arith.constant 0 : i32
    %c0_i32_0 = arith.constant 0 : i32
    %c0_i32_1 = arith.constant 0 : i32
    return %c0_i32, %c0_i32_0 : i32, i32
  }
  func.func @transform_8(%arg0: i32) -> (i32, i32) {
    %c0_i32 = arith.constant 0 : i32
    %c0_i32_0 = arith.constant 0 : i32
    %c0_i32_1 = arith.constant 0 : i32
    return %c0_i32, %c0_i32_0 : i32, i32
  }
  func.func @transform_9(%arg0: i32) -> (i32, i32) {
    %c0_i32 = arith.constant 0 : i32
    %c0_i32_0 = arith.constant 0 : i32
    return %c0_i32, %arg0 : i32, i32
  }
}

</mosaic_0001>

<bundles_post_ra>
// kernel: tpu_custom_call.1
= control target key start
LH: loop header
LB: loop body
LE: loop exit
PB: predicated region body
PF: predicated region fallthrough
CT: control target
= control target key end

     0   :  { %s838_s0 = inlined_call_operand.vmem [shape: bf16[16,128], index: 0, kind: input, shape index: {}]   ;;  %s839_s1 = inlined_call_operand.vmem [shape: bf16[128,128], index: 1, kind: input, shape index: {}]   ;;  %s840_s2 = inlined_call_operand.vmem [shape: f32[1,128], index: 2, kind: input, shape index: {}]   ;;  %s841_s3 = inlined_call_operand.hbm [shape: bf16[128,128], index: 3, kind: input, shape index: {}]   ;;  %s842_s4 = inlined_call_operand.vmem [shape: f32[1,128], index: 4, kind: input, shape index: {}]   ;;  %s843_s5 = inlined_call_operand.vmem [shape: bf16[128,64], index: 5, kind: input, shape index: {}]   ;;  %s844_s6 = inlined_call_operand.vmem [shape: f32[1,64], index: 6, kind: input, shape index: {}]   ;;  %s845_s7 = inlined_call_operand.vmem [shape: f32[1,64], index: 7, kind: input, shape index: {}]   ;;  %s846_s8 = inlined_call_operand.<no memory space> [shape: f32[1,1], index: 8, kind: input, shape index: {}]   ;;  %s847_s9 = inlined_call_operand.hbm [shape: f32[1,16], index: 9, kind: output, shape index: {}]  }
   0x1   :  { %v14_v0 = vstv %s846_s8 }
   0x2   :  { %15 = vst [vmem:[#allocation2] sm:$0x1] %v14_v0 }
   0x3   :  { %16 = vsyncpa [#allocation4], 0 }
   0x4   :  { %17 = vsyncpa [#allocation5], 0  ;;  %s661_s11 = smov [#allocation3]   ;;  %s613_s15 = scalar_lea.hbm %s841_s3, 1024 }
   0x5   :  { %s29_s12 = sshll.u32 %s661_s11, 4  ;;  %p614_p0 = scmp.ne.s32.totalorder %s841_s3, %s613_s15  ;;  %s30_s12 = int_to_ptr.vmem [resolvable:$true] %s29_s12 }
   0x6   :  { %p617_p1 = scmp.lt.u32.totalorder %s613_s15, %s841_s3 }
   0x8   :  { %p619_p2 = pnand %p617_p1, %p614_p0 }
   0xa   :  { %622 = shalt.err (!%p619_p2)
}
   0xb   :  { %s623_s8 = scalar_lea.vmem %s30_s12, 1024  ;;  %p628_p4 = scmp.lt.s32.totalorder %s30_s12, %s30_s12 }
   0xc   :  { %p624_p3 = scmp.ne.s32.totalorder %s30_s12, %s623_s8  ;;  %p629_p5 = scmp.lt.s32.totalorder %s623_s8, %s623_s8 }
   0xe   :  { %p630_p6 = por %p629_p5, %p628_p4 }
  0x10   :  { %p631_p7 = pnand %p630_p6, %p624_p3 }
  0x12   :  { %634 = shalt.err (!%p631_p7)
}
  0x13   :  { %s662_s20 = smov 64   ;;  %s663_s21 = smov 4  }
  0x14   :  { %35 = dma.hbm_to_vmem [thread:$0]  %s841_s3, 1024, %s30_s12, [#allocation4], %s662_s20, %s662_s20, %s663_s21  }
  0x15   :  { %657 = dma.done.wait [#allocation4], 1024  }
  0x16   :  { %658 = vsyncadd [#allocation4], 4294966272  ;;  %v664_v1 = vmov 0.0   ;;  %vm665_vm0 = vmmov 0   ;;  %v588_v2 = vld [vmem:[%s839_s1] sm:$0xff]   ;;  %v589_v3 = vld [vmem:[%s839_s1 + $0x8] sm:$0xff]   ;;  %v424_v63 = vlaneseq }
  0x17   :  { %519 = vmatprep.subr.bf16.mxu0 %v664_v1  ;;  %535 = vmatprep.mubr.msk.bf16.mxu0 %vm665_vm0, %v664_v1  ;;  %v590_v4 = vld [vmem:[%s839_s1 + $0x10] sm:$0xff]   ;;  %v597_v5 = vld [vmem:[#allocation3] sm:$0xff]   ;;  %v591_v6 = vld [vmem:[%s839_s1 + $0x18] sm:$0xff]   ;;  %v666_v48 = vmov 0   ;;  %vm411_vm1 = vcmask 523264   ;;  %vm443_vm2 = vcmask 130112  }
  0x18   :  { %539 = vmatprep.subr.bf16.mxu1 %v664_v1  ;;  %555 = vmatprep.mubr.msk.bf16.mxu1 %vm665_vm0, %v664_v1  ;;  %v598_v7 = vld [vmem:[#allocation3 + $0x8] sm:$0xff]   ;;  %v592_v8 = vld [vmem:[%s839_s1 + $0x20] sm:$0xff]   ;;  %v599_v9 = vld [vmem:[#allocation3 + $0x10] sm:$0xff]   ;;  %v425_v0 = vshrl.u32 %v424_v63, 7  ;;  %vm446_vm3 = vcmask 122880  }
  0x19   :  { %520 = vmatpush3.bf16.msra.mxu0 %v588_v2  ;;  %540 = vmatpush3.bf16.msra.mxu1 %v597_v5  ;;  %v593_v10 = vld [vmem:[%s839_s1 + $0x28] sm:$0xff]   ;;  %v600_v11 = vld [vmem:[#allocation3 + $0x18] sm:$0xff]   ;;  %v594_v12 = vld [vmem:[%s839_s1 + $0x30] sm:$0xff]  }
  0x1a   :  { %521 = vmatprep.subr.bf16.mxu0 %v664_v1  ;;  %541 = vmatprep.subr.bf16.mxu1 %v664_v1  ;;  %v601_v13 = vld [vmem:[#allocation3 + $0x20] sm:$0xff]   ;;  %v595_v14 = vld [vmem:[%s839_s1 + $0x38] sm:$0xff]   ;;  %v602_v15 = vld [vmem:[#allocation3 + $0x28] sm:$0xff]  }
  0x1b   :  { %v596_v16 = vld [vmem:[%s838_s0] sm:$0xff]   ;;  %v603_v17 = vld [vmem:[#allocation3 + $0x30] sm:$0xff]   ;;  %v606_v20 = vld [vmem:[%s843_s5 + $0x8] sm:$0xff]   ;;  %586 = vset.pattern.permute.xlu1 %v666_v48  ;;  %587 = vset.pattern.permute.xlu0 %v666_v48 }
  0x1c   :  { %v604_v18 = vld [vmem:[#allocation3 + $0x38] sm:$0xff]   ;;  %v607_v21 = vld [vmem:[%s843_s5 + $0x10] sm:$0xff]   ;;  %v610_v24 = vld [vmem:[%s843_s5 + $0x28] sm:$0xff]  }
  0x1d   :  { %522 = vmatpush3.bf16.msra.mxu0 %v589_v3  ;;  %542 = vmatpush3.bf16.msra.mxu1 %v598_v7  ;;  %v605_v19 = vld [vmem:[%s843_s5] sm:$0xff]   ;;  %v608_v22 = vld [vmem:[%s843_s5 + $0x18] sm:$0xff]   ;;  %v611_v35 = vld [vmem:[%s843_s5 + $0x30] sm:$0xff]   ;;  %v433_v3 = vand.u32 127, %v424_v63 }
  0x1e   :  { %523 = vmatprep.subr.bf16.mxu0 %v664_v1  ;;  %543 = vmatprep.subr.bf16.mxu1 %v664_v1  ;;  %v609_v23 = vld [vmem:[%s843_s5 + $0x20] sm:$0xff]   ;;  %v612_v36 = vld [vmem:[%s843_s5 + $0x38] sm:$0xff]  }
  0x1f   :  { %v463_v25 = vld [vmem:[%s840_s2] ss:$0 sm:$0xff]  ;;  %v438_v5 = vadd.s32 4294967288, %v433_v3  ;;  %v436_v7 = vsub.s32 %v433_v3, %v425_v0 }
  0x20   :  { %v473_v37 = vld [vmem:[%s842_s4] ss:$0 sm:$0xff] }
  0x21   :  { %524 = vmatpush3.bf16.msra.mxu0 %v590_v4  ;;  %544 = vmatpush3.bf16.msra.mxu1 %v599_v9  ;;  %v418_v47 = vld [vmem:[#allocation2] sm:$0x1]  ;;  %v441_v9 = vsub.s32 %v438_v5, %v425_v0 }
  0x22   :  { %525 = vmatprep.subr.bf16.mxu0 %v664_v1  ;;  %545 = vmatprep.subr.bf16.mxu1 %v664_v1  ;;  %v482_v49 = vld [vmem:[%s844_s6] ss:$0 sm:$0xff]  ;;  %s667_s6 = smov [#allocation6]  }
  0x23   :  { %421 = vperm.xlu1 %586, %v418_v47   ;;  %v491_v54 = vld [vmem:[%s845_s7] ss:$0 sm:$0xff]  ;;  %s454_s7 = sshll.u32 %s667_s6, 4  ;;  %s455_s7 = int_to_ptr.vmem [resolvable:$true] %s454_s7 }
  0x24   :  { %s635_s16 = scalar_lea.vmem %s455_s7, 16  ;;  %s639_s17 = scalar_lea.vmem %s455_s7, 32 }
  0x25   :  { %526 = vmatpush3.bf16.msra.mxu0 %v591_v6  ;;  %546 = vmatpush3.bf16.msra.mxu1 %v600_v11  ;;  %p636_p8 = scmp.ne.s32.totalorder %s455_s7, %s635_s16  ;;  %p640_p9 = scmp.lt.s32.totalorder %s455_s7, %s455_s7 }
  0x26   :  { %527 = vmatprep.subr.bf16.mxu0 %v664_v1  ;;  %547 = vmatprep.subr.bf16.mxu1 %v664_v1  ;;  %p641_p10 = scmp.lt.s32.totalorder %s639_s17, %s635_s16 }
  0x28   :  { %p642_p11 = por %p641_p10, %p640_p9 }
  0x29   :  { %528 = vmatpush3.bf16.msra.mxu0 %v592_v8  ;;  %548 = vmatpush3.bf16.msra.mxu1 %v601_v13 }
  0x2a   :  { %529 = vmatprep.subr.bf16.mxu0 %v664_v1  ;;  %549 = vmatprep.subr.bf16.mxu1 %v664_v1  ;;  %p643_p12 = pnand %p642_p11, %p636_p8 }
  0x2d   :  { %530 = vmatpush3.bf16.msra.mxu0 %v593_v10  ;;  %550 = vmatpush3.bf16.msra.mxu1 %v602_v15 }
  0x2e   :  { %531 = vmatprep.subr.bf16.mxu0 %v664_v1  ;;  %551 = vmatprep.subr.bf16.mxu1 %v664_v1 }
  0x31   :  { %532 = vmatpush3.bf16.msra.mxu0 %v594_v12  ;;  %552 = vmatpush3.bf16.msra.mxu1 %v603_v17 }
  0x32   :  { %533 = vmatprep.subr.bf16.mxu0 %v664_v1  ;;  %553 = vmatprep.subr.bf16.mxu1 %v664_v1 }
  0x35   :  { %534 = vmatpush3.bf16.msra.mxu0 %v595_v14  ;;  %554 = vmatpush3.bf16.msra.mxu1 %v604_v18 }
  0x36   :  { %559 = vmatprep.subr.bf16.mxu0 %v664_v1 }
  0x38   :  { %536 = vmatmul.mubr.bf16.vlgmr.msra.gmra.mrb[0].mxu0 %v596_v16 }
  0x39   :  { %575 = vmatprep.mubr.msk.bf16.mxu0 %vm665_vm0, %v664_v1  ;;  %560 = vmatpush3.bf16.msra.mxu0 %v605_v19 }
  0x3a   :  { %561 = vmatprep.subr.bf16.mxu0 %v664_v1 }
  0x3d   :  { %562 = vmatpush3.bf16.msra.mxu0 %v606_v20 }
  0x3e   :  { %563 = vmatprep.subr.bf16.mxu0 %v664_v1 }
  0x41   :  { %564 = vmatpush3.bf16.msra.mxu0 %v607_v21 }
  0x42   :  { %565 = vmatprep.subr.bf16.mxu0 %v664_v1 }
  0x45   :  { %566 = vmatpush3.bf16.msra.mxu0 %v608_v22 }
  0x46   :  { %567 = vmatprep.subr.bf16.mxu0 %v664_v1 }
  0x49   :  { %568 = vmatpush3.bf16.msra.mxu0 %v609_v23 }
  0x4a   :  { %569 = vmatprep.subr.bf16.mxu0 %v664_v1 }
  0x4d   :  { %570 = vmatpush3.bf16.msra.mxu0 %v610_v24 }
  0x4e   :  { %571 = vmatprep.subr.bf16.mxu0 %v664_v1 }
  0x51   :  { %572 = vmatpush3.bf16.msra.mxu0 %v611_v35 }
  0x52   :  { %573 = vmatprep.subr.bf16.mxu0 %v664_v1  ;;  %v426_v1 = vsub.s32 0, %v425_v0 }
  0x55   :  { %574 = vmatpush3.bf16.msra.mxu0 %v612_v36 }
  0xa2   :  { %v422_v2 = vpop.permute.xlu1 %421 }
  0xa3   :  { %v427_v4 = vrot.slane %v422_v2, %v426_v1 }
 0x10b   :  { %v163_v26 = vpop.f32.mrb[0].mxu0 }
 0x10c   :  { %v164_v27 = vadd.f32 %v463_v25, %v163_v26  ;;  %v537_v28 = vpop.f32.mrb[1].mxu0 }
 0x10d   :  { %v166_v29 = vpop.f32.mrb[2].mxu0 }
 0x10e   :  { %v167_v30 = vadd.f32 %v463_v25, %v166_v29  ;;  %v538_v31 = vpop.f32.mrb[3].mxu0  ;;  %v170_v32 = vmax.f32 %v164_v27, 0.0 }
 0x110   :  { %v171_v33 = vmax.f32 %v167_v30, 0.0 }
 0x112   :  { %v172_v34 = vpack.c.bf16 %v171_v33, %v170_v32 }
 0x114   :  { %556 = vmatmul.mubr.bf16.vlgmr.msra.gmra.mrb[0].mxu1 %v172_v34 }
 0x1e7   :  { %v278_v38 = vpop.f32.mrb[0].mxu1 }
 0x1e8   :  { %v279_v39 = vadd.f32 %v473_v37, %v278_v38  ;;  %v557_v40 = vpop.f32.mrb[1].mxu1 }
 0x1e9   :  { %v281_v41 = vpop.f32.mrb[2].mxu1 }
 0x1ea   :  { %v282_v42 = vadd.f32 %v473_v37, %v281_v41  ;;  %v558_v43 = vpop.f32.mrb[3].mxu1  ;;  %v285_v44 = vmax.f32 %v279_v39, 0.0 }
 0x1ec   :  { %v286_v45 = vmax.f32 %v282_v42, 0.0 }
 0x1ee   :  { %v287_v46 = vpack.c.bf16 %v286_v45, %v285_v44 }
 0x1f0   :  { %576 = vmatmul.mubr.bf16.vlgmr.msra.gmra.mrb[4].mxu0 %v287_v46 }
 0x2c3   :  { %v393_v50 = vpop.f32.mrb[4].mxu0 }
 0x2c4   :  { %v394_v51 = vadd.f32 %v482_v49, %v393_v50  ;;  %v577_v52 = vpop.f32.mrb[5].mxu0 }
 0x2c5   :  { %v396_v53 = vpop.f32.mrb[6].mxu0 }
 0x2c6   :  { %v400_v55 = vmax.f32 %v394_v51, 0.0  ;;  %v397_v56 = vadd.f32 %v482_v49, %v396_v53  ;;  %v578_v57 = vpop.f32.mrb[7].mxu0 }
 0x2c8   :  { %v401_v58 = vmax.f32 %v397_v56, 0.0  ;;  %v409_v59 = vmul.f32 %v491_v54, %v400_v55 }
 0x2ca   :  { %v412_v60 = vsel %vm411_vm1, %v409_v59, 0.0  ;;  %v410_v61 = vmul.f32 %v491_v54, %v401_v58 }
 0x2cb   :  { %413 = vadd.xlane.f32.xlu0 %v412_v60 }
 0x2cc   :  { %v415_v62 = vsel %vm411_vm1, %v410_v61, 0.0 }
 0x2cf   :  { %416 = vadd.xlane.f32.xlu0 %v415_v62 }
 0x358   :  { %v414_v6 = vpop.xlane.xlu0 %413 }
 0x359   :  { %v428_v8 = vadd.f32 %v427_v4, %v414_v6 }
 0x35b   :  { %v437_v12 = vrot.slane %v428_v8, %v436_v7 }
 0x35c   :  { %v417_v10 = vpop.xlane.xlu0 %416 }
 0x35d   :  { %v429_v11 = vadd.f32 %v427_v4, %v417_v10 }
 0x35f   :  { %v442_v13 = vrot.slane %v429_v11, %v441_v9 }
 0x361   :  { %v444_v14 = vsel %vm443_vm2, %v442_v13, %v437_v12 }
 0x362   :  { %447 = vst.msk [vmem:[#allocation6] sm:$0x1] %vm446_vm3, %v444_v14 }
 0x363   :  { %646 = shalt.err (!%p643_p12)
}
 0x364   :  { %s647_s1 = scalar_lea.hbm %s847_s9, 16 }
 0x365   :  { %p648_p13 = scmp.ne.s32.totalorder %s847_s9, %s647_s1  ;;  %p651_p0 = scmp.lt.u32.totalorder %s647_s1, %s847_s9 }
 0x367   :  { %p653_p1 = pnand %p651_p0, %p648_p13 }
 0x369   :  { %656 = shalt.err (!%p653_p1)
}
 0x36a   :  { %457 = dma.vmem_to_hbm [thread:$0]  %s455_s7, 16, %s847_s9, [#allocation5]  }
 0x36b   :  { %659 = dma.done.wait [#allocation5], 16  }
 0x36c   :  { %660 = vsyncadd [#allocation5], 4294967280 }
 0x36d   :  { %461 = vsyncpa [#allocation4], 1 }
 0x36e   :  { %462 = vsyncpa [#allocation5], 1 }

</bundles_post_ra>
